<compile_context>
chip_gen: v5e
topology: v5e:2x2
jax: 0.10.0
libtpu: 0.0.40
codegen_flags: <defaults>
</compile_context>

<pallas_src>
import numpy as np
import jax
import jax.numpy as jnp
from jax.experimental import pallas as pl
from jax.experimental.pallas import tpu as pltpu


# ----------------------------------------------------------------------------
# Pallas kernel: one batch element per grid step
# ----------------------------------------------------------------------------
def attention_kernel(hid_ref, enc_ref, w_ref, b_ref, out_ref):
    # hid_ref: (1, 1, H)   decoder hidden state for this batch element
    # enc_ref: (1, T, H)   encoder outputs for this batch element
    # w_ref:   (H, H)      raw nn.Linear weight (out_features, in_features), resident
    # b_ref:   (1, H)      nn.Linear bias, resident
    # out_ref: (1, 1, T)   softmax attention weights
    hid = hid_ref[0]                                   # (1, H)
    enc = enc_ref[0]                                   # (T, H)
    w = w_ref[...]                                     # (H, H)
    b = b_ref[...]                                     # (1, H)

    # score[t] = hid . (enc[t] @ W^T + b)  ==  (hid @ W) . enc[t]  +  hid . b
    q = jnp.dot(hid, w, preferred_element_type=jnp.float32)              # (1, H)
    c = jnp.sum(hid * b, axis=-1, keepdims=True)                         # (1, 1)
    scores = jnp.dot(q, enc.T, preferred_element_type=jnp.float32) + c   # (1, T)

    # numerically-stable softmax along T (lane axis)
    m = jnp.max(scores, axis=-1, keepdims=True)
    e = jnp.exp(scores - m)
    s = jnp.sum(e, axis=-1, keepdims=True)
    out_ref[0] = (e / s).astype(out_ref.dtype)


# ----------------------------------------------------------------------------
# Wrapper
# ----------------------------------------------------------------------------
def attention_forward(hidden, encoder_outputs, w_attn, b_attn):
    """hidden: (B, 1, H), encoder_outputs: (B, T, H). Returns (B, 1, T) attention weights."""
    B, _, H = hidden.shape
    _, T, _ = encoder_outputs.shape
    b2d = b_attn.reshape(1, H).astype(jnp.float32)

    return pl.pallas_call(
        attention_kernel,
        grid=(B,),
        in_specs=[
            pl.BlockSpec((1, 1, H), lambda b: (b, 0, 0)),   # hidden, per batch element
            pl.BlockSpec((1, T, H), lambda b: (b, 0, 0)),   # encoder outputs, per batch element
            pl.BlockSpec((H, H), lambda b: (0, 0)),         # W: resident across grid
            pl.BlockSpec((1, H), lambda b: (0, 0)),         # bias: resident across grid
        ],
        out_specs=pl.BlockSpec((1, 1, T), lambda b: (b, 0, 0)),
        out_shape=jax.ShapeDtypeStruct((B, 1, T), jnp.float32),
        compiler_params=pltpu.CompilerParams(dimension_semantics=("parallel",)),
    )(
        hidden.astype(jnp.float32),
        encoder_outputs.astype(jnp.float32),
        w_attn.astype(jnp.float32),
        b2d,
    )


# ----------------------------------------------------------------------------
# Pure-JAX reference (mirrors the PyTorch op order; correctness check only)
# ----------------------------------------------------------------------------
def attention_reference(hidden, encoder_outputs, w_attn, b_attn):
    # Linear: energy[b,t,:] = enc[b,t,:] @ W^T + b
    energy = jnp.einsum("bth,oh->bto", encoder_outputs, w_attn) + b_attn   # (B, T, H)
    # bmm(hidden (B,1,H), energy^T (B,H,1)) per timestep -> (B, T)
    scores = jnp.einsum("bh,bth->bt", hidden[:, 0, :], energy)
    attn = jax.nn.softmax(scores, axis=-1)
    return attn[:, None, :]                                                # (B, 1, T)


if __name__ == "__main__":
    B, T, H = 2, 8, 32          # batch, max_length (encoder seq len), dim_hidden

    key = jax.random.PRNGKey(0)
    k1, k2, k3, k4 = jax.random.split(key, 4)
    hidden = jax.random.normal(k1, (B, 1, H), jnp.float32)
    encoder_outputs = jax.random.normal(k2, (B, T, H), jnp.float32)
    bound = 1.0 / np.sqrt(H)    # PyTorch nn.Linear default init range
    w_attn = jax.random.uniform(k3, (H, H), jnp.float32, -bound, bound)
    b_attn = jax.random.uniform(k4, (H,), jnp.float32, -bound, bound)

    out = attention_forward(hidden, encoder_outputs, w_attn, b_attn)
    jax.block_until_ready(out)

    ref = attention_reference(hidden, encoder_outputs, w_attn, b_attn)
    assert out.shape == (B, 1, T)
    np.testing.assert_allclose(np.asarray(out), np.asarray(ref), rtol=1e-4, atol=1e-5)
    np.testing.assert_allclose(np.asarray(out).sum(-1), np.ones((B, 1)), rtol=1e-5, atol=1e-5)

    print("KERNEL_OK")
</pallas_src>

<mosaic_0001>
module attributes {stable_mosaic.version = 11 : i64} {
  func.func @attention_kernel(%arg0: i32, %arg1: memref<1x1x32xf32, #tpu.memory_space<vmem>>, %arg2: memref<1x8x32xf32, #tpu.memory_space<vmem>>, %arg3: memref<32x32xf32, #tpu.memory_space<vmem>>, %arg4: memref<1x32xf32, #tpu.memory_space<vmem>>, %arg5: memref<1x1x8xf32, #tpu.memory_space<vmem>>) attributes {dimension_semantics = [#tpu.dimension_semantics<parallel>], iteration_bounds = array<i64: 2>, scalar_prefetch = 0 : i64, scratch_operands = 0 : i64, tpu.core_type = #tpu.core_type<tc>, window_params = [{transform_indices = @transform_0, window_bounds = array<i64: 1, 1, 32>}, {transform_indices = @transform_1, window_bounds = array<i64: 1, 8, 32>}, {pipeline_mode = #tpu.pipeline_mode<synchronous>, transform_indices = @transform_2, window_bounds = array<i64: 32, 32>}, {pipeline_mode = #tpu.pipeline_mode<synchronous>, transform_indices = @transform_3, window_bounds = array<i64: 1, 32>}, {transform_indices = @transform_4, window_bounds = array<i64: 1, 1, 8>}]} {
    %c0 = arith.constant 0 : index
    %c0_0 = arith.constant 0 : index
    %c0_1 = arith.constant 0 : index
    %0 = vector.load %arg1[%c0, %c0_0, %c0_1] : memref<1x1x32xf32, #tpu.memory_space<vmem>>, vector<1x1x32xf32>
    %1 = vector.shape_cast %0 : vector<1x1x32xf32> to vector<1x32xf32>
    %c0_2 = arith.constant 0 : index
    %c0_3 = arith.constant 0 : index
    %c0_4 = arith.constant 0 : index
    %2 = vector.load %arg2[%c0_2, %c0_3, %c0_4] : memref<1x8x32xf32, #tpu.memory_space<vmem>>, vector<1x8x32xf32>
    %3 = vector.shape_cast %2 : vector<1x8x32xf32> to vector<8x32xf32>
    %c0_5 = arith.constant 0 : index
    %c0_6 = arith.constant 0 : index
    %4 = vector.load %arg3[%c0_5, %c0_6] : memref<32x32xf32, #tpu.memory_space<vmem>>, vector<32x32xf32>
    %c0_7 = arith.constant 0 : index
    %c0_8 = arith.constant 0 : index
    %5 = vector.load %arg4[%c0_7, %c0_8] : memref<1x32xf32, #tpu.memory_space<vmem>>, vector<1x32xf32>
    %cst = arith.constant dense<0.000000e+00> : vector<1x32xf32>
    %6 = tpu.matmul %1, %4, %cst {dimension_numbers = #tpu.dot_dimension_numbers<[1], [0], [0], [1], [0, 0, 1, 1], [], []>} : vector<1x32xf32>, vector<32x32xf32>, vector<1x32xf32> -> vector<1x32xf32>
    %7 = arith.mulf %1, %5 : vector<1x32xf32>
    %cst_9 = arith.constant dense<0.000000e+00> : vector<1xf32>
    %8 = vector.multi_reduction <add>, %7, %cst_9 [1] : vector<1x32xf32> to vector<1xf32>
    %9 = vector.shape_cast %8 : vector<1xf32> to vector<1x1xf32>
    %10 = tpu.transpose %3, [1, 0] : vector<8x32xf32> -> vector<32x8xf32>
    %cst_10 = arith.constant dense<0.000000e+00> : vector<1x8xf32>
    %11 = tpu.matmul %6, %10, %cst_10 {dimension_numbers = #tpu.dot_dimension_numbers<[1], [0], [0], [1], [0, 0, 1, 1], [], []>} : vector<1x32xf32>, vector<32x8xf32>, vector<1x8xf32> -> vector<1x8xf32>
    %12 = vector.broadcast %9 : vector<1x1xf32> to vector<1x8xf32>
    %13 = arith.addf %11, %12 : vector<1x8xf32>
    %cst_11 = arith.constant dense<0xFF800000> : vector<1xf32>
    %14 = vector.multi_reduction <maximumf>, %13, %cst_11 [1] : vector<1x8xf32> to vector<1xf32>
    %15 = vector.shape_cast %14 : vector<1xf32> to vector<1x1xf32>
    %16 = vector.broadcast %15 : vector<1x1xf32> to vector<1x8xf32>
    %17 = arith.subf %13, %16 : vector<1x8xf32>
    %18 = math.exp %17 : vector<1x8xf32>
    %cst_12 = arith.constant dense<0.000000e+00> : vector<1xf32>
    %19 = vector.multi_reduction <add>, %18, %cst_12 [1] : vector<1x8xf32> to vector<1xf32>
    %20 = vector.shape_cast %19 : vector<1xf32> to vector<1x1xf32>
    %21 = vector.broadcast %20 : vector<1x1xf32> to vector<1x8xf32>
    %22 = arith.divf %18, %21 : vector<1x8xf32>
    %c0_13 = arith.constant 0 : index
    %c0_14 = arith.constant 0 : index
    %c0_15 = arith.constant 0 : index
    %23 = vector.load %arg5[%c0_13, %c0_14, %c0_15] : memref<1x1x8xf32, #tpu.memory_space<vmem>>, vector<1x1x8xf32>
    %24 = vector.shape_cast %23 : vector<1x1x8xf32> to vector<1x8xf32>
    %25 = vector.shape_cast %22 : vector<1x8xf32> to vector<1x1x8xf32>
    tpu.vector_store %arg5[%c0_13, %c0_14, %c0_15], %25 {strides = array<i32>} : memref<1x1x8xf32, #tpu.memory_space<vmem>>, vector<1x1x8xf32>,
    return
  }
  func.func @transform_0(%arg0: i32) -> (i32, i32, i32) {
    %c0_i32 = arith.constant 0 : i32
    %c0_i32_0 = arith.constant 0 : i32
    %c0_i32_1 = arith.constant 0 : i32
    return %arg0, %c0_i32, %c0_i32_0 : i32, i32, i32
  }
  func.func @transform_1(%arg0: i32) -> (i32, i32, i32) {
    %c0_i32 = arith.constant 0 : i32
    %c0_i32_0 = arith.constant 0 : i32
    %c0_i32_1 = arith.constant 0 : i32
    return %arg0, %c0_i32, %c0_i32_0 : i32, i32, i32
  }
  func.func @transform_2(%arg0: i32) -> (i32, i32) {
    %c0_i32 = arith.constant 0 : i32
    %c0_i32_0 = arith.constant 0 : i32
    %c0_i32_1 = arith.constant 0 : i32
    return %c0_i32, %c0_i32_0 : i32, i32
  }
  func.func @transform_3(%arg0: i32) -> (i32, i32) {
    %c0_i32 = arith.constant 0 : i32
    %c0_i32_0 = arith.constant 0 : i32
    %c0_i32_1 = arith.constant 0 : i32
    return %c0_i32, %c0_i32_0 : i32, i32
  }
  func.func @transform_4(%arg0: i32) -> (i32, i32, i32) {
    %c0_i32 = arith.constant 0 : i32
    %c0_i32_0 = arith.constant 0 : i32
    %c0_i32_1 = arith.constant 0 : i32
    return %arg0, %c0_i32, %c0_i32_0 : i32, i32, i32
  }
}

</mosaic_0001>

<bundles_post_ra>
// kernel: tpu_custom_call.1
= control target key start
LH: loop header
LB: loop body
LE: loop exit
PB: predicated region body
PF: predicated region fallthrough
CT: control target
= control target key end

     0   :  { %s913_s0 = inlined_call_operand.hbm [shape: f32[2,1,32], index: 0, kind: input, shape index: {}]   ;;  %s914_s1 = inlined_call_operand.hbm [shape: f32[2,8,32], index: 1, kind: input, shape index: {}]   ;;  %s915_s2 = inlined_call_operand.hbm [shape: f32[32,32], index: 2, kind: input, shape index: {}]   ;;  %s916_s3 = inlined_call_operand.vmem [shape: f32[1,32], index: 3, kind: input, shape index: {}]   ;;  %s917_s4 = inlined_call_operand.hbm [shape: f32[2,1,8], index: 4, kind: output, shape index: {}]  }
   0x1   :  { %919 = sst [smem:[#allocation15_spill]] %s915_s2 }
   0x2   :  { %9 = vsyncpa [#allocation3], 0 }
   0x3   :  { %11 = vsyncpa [#allocation3 + $0x1], 0 }
   0x4   :  { %12 = vsyncpa [#allocation6], 0 }
   0x5   :  { %14 = vsyncpa [#allocation6 + $0x1], 0 }
   0x6   :  { %15 = vsyncpa [#allocation4], 0 }
   0x7   :  { %17 = vsyncpa [#allocation4 + $0x1], 0  ;;  %s736_s15 = smov 0   ;;  %s738_s16 = smov 0  }
   0x8   :  { %s740_s17 = smov 0   ;;  %s742_s18 = smov 0  }
   0x9 LB: > { %920 = sst [smem:[#allocation13_spill]] %s702_s17  ;;  %s760_s22 = sadd.s32 4294967295, %s706_s18   ;;  %s706_s18 = sphi %s742_s18, %s934_s18   ;;  %s702_s17 = sphi %s740_s17, %s931_s17   ;;  %s698_s16 = sphi %s738_s16, %s933_s16   ;;  %s694_s15 = sphi %s736_s15, %s932_s15  }
   0xa   : > { %s921_s2 = sld [smem:[#allocation15_spill]]  ;;  %p461_p0 = scmp.ge.s32.totalorder %s706_s18, 1 }
   0xb   : > { %p44_p1 = scmp.eq.s32.totalorder %s760_s22, 0  ;;  %p148_p2 = scmp.lt.s32.totalorder %s706_s18, 3 }
   0xc   : > { %s708_s24 = smov [#allocation7]   ;;  %s709_s26 = smov 128  }
   0xd   : > { %p765_p3 = pnand %p461_p0, %p148_p2  ;;  %s161_s25 = sshll.u32 %s708_s24, 4  ;;  %s162_s25 = int_to_ptr.vmem [resolvable:$true] %s161_s25 }
   0xe   : > { %s710_s27 = smov 8   ;;  %s460_s28 = sadd.s32 4294967294, %s706_s18  }
   0xf   : > { %p484_p4 = pneg %p765_p3  ;;  %s776_s29 = sadd.s32 1, %s706_s18  }
  0x10   : > { %s159_s21 = sshll.u32 %s921_s2, 4  ;;  %s30_s30 = sadd.s32 1, %s702_s17  ;;  %s160_s21 = int_to_ptr.hbm [resolvable:$true] %s159_s21 }
  0x11   : > { %p485_p6 = pnand %p484_p4, %p44_p1  ;;  %s27_s5 = ssub.s32 %s706_s18, %s776_s29 }
  0x12   : > { %p37_p7 = scmp.ne.s32.totalorder %s702_s17, %s698_s16  ;;  %p28_p8 = scmp.eq.s32.totalorder %s27_s5, 0 }
  0x13   : > { %487 = dma.hbm_to_vmem [thread:$0]  (!%p485_p6), %s160_s21, 512, %s162_s25, [#allocation6], %s709_s26, %s709_s26, %s710_s27  }
  0x14   : > { %p38_p9 = scmp.eq.s32.totalorder %s706_s18, 0  ;;  %p43_p10 = scmp.ne.s32.totalorder %s698_s16, %s694_s15 }
  0x15   : > { %p135_p11 = scmp.eq.s32.totalorder %s760_s22, 1  ;;  %p141_p2 = scmp.eq.s32.totalorder %s460_s28, 1 }
  0x16   : > { %s788_s6 = scalar_select %p28_p8, %s702_s17, %s30_s30  }
  0x17   : > { %p790_p12 = por %p38_p9, %p37_p7  ;;  %p796_p13 = por %p44_p1, %p43_p10 }
  0x18   : > { %923 = sst [smem:[#allocation14_spill]] %s788_s6  ;;  %p800_p0 = por %p135_p11, %p37_p7 }
  0x19   : > { %p500_p4 = scmp.lt.s32.totalorder %s706_s18, 2  ;;  %s178_s10 = sand.u32 1, %s702_s17  }
  0x1a   : > { %p806_p6 = por %p141_p2, %p43_p10  ;;  %s184_s14 = scalar_lea.hbm %s913_s0, %s706_s18 }
  0x1b   : > { %s186_s19 = sshll.u32 %s184_s14, 4  ;;  %s181_s20 = scalar_lea.vmem [#allocation2], %s178_s10  ;;  %s187_s19 = int_to_ptr.hbm [resolvable:$true] %s186_s19 }
  0x1c   : > { %s188_s21 = sshll.u32 %s181_s20, 4  ;;  %p816_p7 = pnand %p500_p4, %p790_p12  ;;  %s189_s21 = int_to_ptr.vmem [resolvable:$true] %s188_s21 }
  0x1d   : > { %s195_s25 = sand.u32 1, %s706_s18   ;;  %s464_s26 = sshll.u32 %s178_s10, 3 }
  0x1e   : > { %s179_s27 = scalar_lea.sflag [#allocation3], %s178_s10  ;;  %s572_s28 = sshra.s32 %s187_s19, 4  ;;  %s573_s28 = int_to_ptr.hbm [resolvable:$true] %s572_s28 }
  0x1f   : > { %s574_s30 = scalar_lea.hbm %s573_s28, 1  ;;  %p576_p9 = pneg %p816_p7 }
  0x20   : > { %p575_p8 = scmp.ne.s32.totalorder %s573_s28, %s574_s30  ;;  %s579_s12 = scalar_lea.hbm %s913_s0, 2 }
  0x21   : > { %p580_p12 = scmp.lt.s32.totalorder %s573_s28, %s913_s0  ;;  %p581_p2 = scmp.lt.s32.totalorder %s579_s12, %s574_s30 }
  0x22   : > { %p577_p10 = pnand %p576_p9, %p575_p8 }
  0x23   : > { %p582_p4 = por %p581_p2, %p580_p12 }
  0x24   : > { %p578_p11 = pneg %p577_p10 }
  0x26   : > { %p583_p5 = pnand %p582_p4, %p578_p11 }
  0x28   : > { %586 = shalt.err (!%p583_p5)
}
  0x29   : > { %491 = dma.hbm_to_vmem [thread:$0]  (!%p816_p7), %s187_s19, 16, %s189_s21, %s179_s27  }
  0x2a   : > { %s465_s10 = sshll.u32 %s706_s18, 3  ;;  %s199_s20 = scalar_lea.vmem [#allocation5], %s464_s26 }
  0x2b   : > { %s207_s2 = sshll.u32 %s199_s20, 4  ;;  %s203_s5 = scalar_lea.hbm %s914_s1, %s465_s10  ;;  %s208_s2 = int_to_ptr.vmem [resolvable:$true] %s207_s2 }
  0x2c   : > { %s205_s7 = sshll.u32 %s203_s5, 4  ;;  %s196_s28 = scalar_lea.sflag [#allocation6], %s195_s25  ;;  %s206_s7 = int_to_ptr.hbm [resolvable:$true] %s205_s7 }
  0x2d   : > { %s602_s30 = sshra.s32 %s206_s7, 4  ;;  %s609_s26 = scalar_lea.hbm %s914_s1, 16  ;;  %s603_s30 = int_to_ptr.hbm [resolvable:$true] %s602_s30 }
  0x2e   : > { %s604_s12 = scalar_lea.hbm %s603_s30, 8  ;;  %p610_p11 = scmp.lt.s32.totalorder %s603_s30, %s914_s1 }
  0x2f   : > { %p605_p5 = scmp.ne.s32.totalorder %s603_s30, %s604_s12  ;;  %p611_p12 = scmp.lt.s32.totalorder %s609_s26, %s604_s12 }
  0x31   : > { %p607_p8 = pnand %p605_p5, %p576_p9  ;;  %p612_p2 = por %p611_p12, %p610_p11 }
  0x33   : > { %p608_p10 = pneg %p607_p8 }
  0x35   : > { %p613_p4 = pnand %p612_p2, %p608_p10 }
  0x37   : > { %616 = shalt.err (!%p613_p4)
}
  0x38   : > { %494 = dma.hbm_to_vmem [thread:$0]  (!%p816_p7), %s206_s7, 128, %s208_s2, %s196_s28  }
  0x39   : > { %216 = sbr.rel (%p765_p3) target bundleno = 597 (0x255), region = 36  ;;  %s852_s17 = sand.u32 (!%p765_p3), 1, %s698_s16  }
  0x3a   : > { %s219_s6 = scalar_lea.sflag (!%p765_p3), [#allocation3], %s852_s17  ;;  %s221_s25 = scalar_lea.vmem (!%p765_p3), [#allocation2], %s852_s17 }
  0x3e   : > { %677 = dma.done.wait (%p796_p13), %s219_s6, 16  }
  0x3f   : > { %679 = vsyncadd (%p796_p13), %s219_s6, 4294967280  ;;  %s227_s2 = sand.u32 1, %s760_s22   ;;  %s467_s24 = sshll.u32 %s852_s17, 3 }
  0x40   : > { %s228_s23 = scalar_lea.sflag [#allocation6], %s227_s2  ;;  %s231_s14 = scalar_lea.vmem [#allocation5], %s467_s24 }
  0x41   : > { %681 = dma.done.wait (%p796_p13), %s228_s23, 128  }
  0x42   : > { %683 = vsyncadd (%p796_p13), %s228_s23, 4294967168 }
  0x43   : > { %685 = dma.done.wait (%p44_p1), [#allocation6], 512  }
  0x44   : > { %687 = vsyncadd (%p44_p1), [#allocation6], 4294966784  ;;  %v270_v0 = vld [vmem:[#allocation7 + $0x18] sm:$0xff]  ;;  %v269_v1 = vld [vmem:[#allocation7 + $0x10] sm:$0xff]  ;;  %vm272_vm0 = vcmask 261120   ;;  %vm297_vm1 = vcmask 253952   ;;  %s362_s7 = scalar_lea.hbm %s917_s4, %s760_s22 }
  0x45   : > { %288 = vmatpush.msra.mxu0 %v270_v0  ;;  %v266_v2 = vld [vmem:[%s231_s14] sm:$0xff]  ;;  %v268_v3 = vld [vmem:[#allocation7 + $0x8] sm:$0xff]  ;;  %v267_v4 = vld [vmem:[#allocation7] sm:$0xff]  ;;  %vm327_vm2 = vcmask 57344   ;;  %s264_s28 = scalar_lea.vmem [#allocation8], %s852_s17  ;;  %s366_s12 = sshll.u32 %s362_s7, 4  ;;  %s367_s12 = int_to_ptr.hbm [resolvable:$true] %s366_s12 }
  0x46   : > { %470 = vmatpush.xpose.msk.msra.mxu1 %vm272_vm0, %v266_v2  ;;  %v265_v5 = vld [vmem:[%s221_s25] sm:$0x1]  ;;  %s364_s30 = sshll.u32 %s264_s28, 4  ;;  %s354_s19 = scalar_lea.sflag [#allocation4], %s852_s17  ;;  %s365_s30 = int_to_ptr.vmem [resolvable:$true] %s364_s30 }
  0x47   : > { %289 = vmatpush.msra.mxu0 %v269_v1  ;;  %v271_v6 = vld [vmem:[%s916_s3] sm:$0x1]  ;;  %s646_s21 = sshra.s32 %s367_s12, 4  ;;  %s652_s13 = scalar_lea.hbm %s917_s4, 2  ;;  %s647_s21 = int_to_ptr.hbm [resolvable:$true] %s646_s21 }
  0x48   : > { %v296_v7 = vmul.f32 %v271_v6, %v265_v5  ;;  %s648_s22 = scalar_lea.hbm %s647_s21, 1  ;;  %p653_p7 = scmp.lt.s32.totalorder %s647_s21, %s917_s4 }
  0x49   : > { %290 = vmatpush.msra.mxu0 %v268_v3  ;;  %p649_p1 = scmp.ne.s32.totalorder %s647_s21, %s648_s22  ;;  %p654_p9 = scmp.lt.s32.totalorder %s652_s13, %s648_s22 }
  0x4a   : > { %v298_v8 = vsel %vm297_vm1, %v296_v7, 0.0 }
  0x4b   : > { %291 = vmatpush.msra.mxu0 %v267_v4  ;;  %299 = vadd.xlane.f32.xlu0 %v298_v8  ;;  %p650_p3 = pnand %p649_p1, %p800_p0  ;;  %p655_p5 = por %p654_p9, %p653_p7 }
  0x4c   : > { %469 = vmatmul.msk.f32.vlgmr.msra.gmra.mxu0 %vm272_vm0, %v265_v5 }
  0x4d   : > { %p651_p13 = pneg %p650_p3 }
  0x4f   : > { %p656_p8 = pnand %p655_p5, %p651_p13 }
  0xbe   : > { %v300_v10 = vpop.xlane.xlu0 %299 }
  0xc9   : > { %v293_v9 = vpop.f32.mrf.mxu0 }
  0xca   : > { %471 = vmatmul.msk.f32.vlgmr.msra.gmra.mxu1 %vm272_vm0, %v293_v9 }
 0x147   : > { %v324_v11 = vpop.f32.mrf.mxu1 }
 0x148   : > { %v325_v12 = vadd.f32 %v324_v11, %v300_v10 }
 0x14a   : > { %v328_v13 = vsel %vm327_vm2, %v325_v12, -inf }
 0x14b   : > { %329 = vmax.xlane.f32.xlu0 %v328_v13 }
 0x1be   : > { %v330_v14 = vpop.xlane.xlu0 %329 }
 0x1bf   : > { %v331_v15 = vsub.f32 %v325_v12, %v330_v14 }
 0x1c1   : > { %v332_v16 = vmul.f32 1.442695, %v331_v15 }
 0x1c3   : > { %538 = vpow2.f32 %v332_v16 }
 0x1c9   : > { %v539_v17 = vpop.eup %538 }
 0x1ca   : > { %v334_v18 = vsel %vm327_vm2, %v539_v17, 0.0 }
 0x1cb   : > { %335 = vadd.xlane.f32.xlu1 %v334_v18 }
 0x23e   : > { %v336_v19 = vpop.xlane.xlu1 %335 }
 0x23f   : > { %540 = vrcp.f32 %v336_v19  ;;  %v348_v23 = vand.u32 2147483648, %v336_v19  ;;  %v346_v25 = vand.u32 2147483647, %v336_v19  ;;  %vm342_vm4 = vweird.f32 %v336_v19 }
 0x241   : > { %v349_v27 = vor.u32 1.1754944e-38, %v348_v23  ;;  %vm347_vm6 = vcmp.eq.f32.partialorder %v346_v25, 8.507059e+37 }
 0x245   : > { %v541_v20 = vpop.eup %540 }
 0x246   : > { %v338_v21 = vmul.f32 %v541_v20, %v336_v19  ;;  %vm343_vm3 = vweird.f32 %v541_v20 }
 0x247   : > { %vm344_vm5 = vmor %vm342_vm4, %vm343_vm3 }
 0x248   : > { %v339_v22 = vsub.f32 1.0, %v338_v21 }
 0x24a   : > { %v340_v24 = vmul.f32 %v541_v20, %v339_v22 }
 0x24c   : > { %v341_v26 = vadd.f32 %v541_v20, %v340_v24 }
 0x24e   : > { %v345_v28 = vsel %vm344_vm5, %v541_v20, %v341_v26 }
 0x24f   : > { %v350_v29 = vsel %vm347_vm6, %v349_v27, %v345_v28 }
 0x250   : > { %v351_v30 = vmul.f32 %v539_v17, %v350_v29 }
 0x252   : > { %352 = vst.msk [vmem:[%s264_s28] sm:$0x1] %vm327_vm2, %v351_v30 }
 0x253   : > { %659 = shalt.err (!%p656_p8)
}
 0x254   : > { %482 = dma.vmem_to_hbm [thread:$0]  (%p800_p0), %s365_s30, 16, %s367_s12, %s354_s19  }
 0x255 PF: > { %s378_s17 = sand.u32 1, %s694_s15   ;;  %p929_p10 = scmp.ge.s32.totalorder %s706_s18, 2 }
 0x256   : > { %s379_s2 = scalar_lea.sflag [#allocation4], %s378_s17 }
 0x257   : > { %p496_p11 = pnand %p929_p10, %p806_p6 }
 0x259   : > { %p497_p12 = pneg %p496_p11 }
 0x25b   : > { %689 = dma.done.wait (%p497_p12), %s379_s2, 16  }
 0x25c   : > { %691 = vsyncadd (%p497_p12), %s379_s2, 4294967280  ;;  %s930_s24 = sld [smem:[#allocation13_spill]]  ;;  %p20_p2 = scmp.ge.s32.totalorder %s776_s29, 4  }
 0x25d   : > { %s931_s17 = sld [smem:[#allocation14_spill]]  ;;  %s932_s15 = smov %s698_s16 }
 0x25e   : > { %s934_s18 = smov %s776_s29  ;;  %22 = sbr.rel (!%p20_p2) target bundleno = 9 (0x9), region = 98 }
 0x262   : > { %s933_s16 = smov %s930_s24 }
 0x263   :  { %384 = vsyncpa [#allocation3], 1 }
 0x264   :  { %386 = vsyncpa [#allocation3 + $0x1], 1 }
 0x265   :  { %387 = vsyncpa [#allocation6], 1 }
 0x266   :  { %389 = vsyncpa [#allocation6 + $0x1], 1 }
 0x267   :  { %390 = vsyncpa [#allocation4], 1 }
 0x268   :  { %392 = vsyncpa [#allocation4 + $0x1], 1 }

</bundles_post_ra>
